<compile_context>
chip_gen: v7x
topology: tpu7x:2x2x1
jax: 0.10.0
libtpu: 0.0.40
codegen_flags: <defaults>
</compile_context>

<pallas_src>
import jax
import jax.numpy as jnp
from jax import lax
from jax.experimental import pallas as pl
from jax.experimental.pallas import tpu as pltpu

DIMS = (61, 128, 32, 1)   # fc1: 61->128, fc2: 128->32, fc3: 32->1


def mlp_kernel(x_ref,
               w1_ref, b1_ref,
               w2_ref, b2_ref,
               w3t_ref, b3_ref,
               o_ref):
    wdt = w1_ref.dtype  # compute dtype of the MXU operands (bf16 by default)

    # fc1 + ReLU  (f32 accumulate, f32 bias/ReLU)
    h = jnp.dot(x_ref[...], w1_ref[...], preferred_element_type=jnp.float32)
    h = jnp.maximum(h + b1_ref[...], 0.0)

    # fc2 + ReLU
    h = jnp.dot(h.astype(wdt), w2_ref[...], preferred_element_type=jnp.float32)
    h = jnp.maximum(h + b2_ref[...], 0.0)

    # fc3 -> lane-dense (1, tile):  y[0, m] = sum_k w3t[0, k] * h[m, k]
    # (NT matmul, same pattern as q @ k.T in flash attention; batch on lanes.)
    y = lax.dot_general(w3t_ref[...], h.astype(wdt),
                        dimension_numbers=(((1,), (1,)), ((), ())),
                        preferred_element_type=jnp.float32)
    o_ref[...] = (y + b3_ref[...]).astype(o_ref.dtype)


def _round_up(n, m):
    return (n + m - 1) // m * m


def _choose_tile(batch, tile_cap):
    """Batch tile: large, lane/sublane legal, and >=2 grid steps when it matters."""
    tile_cap = max(128, (tile_cap // 128) * 128)
    if batch <= 256:
        # Single block equal to the full array: always layout-legal, no waste.
        return batch
    # Multiple of 128 (lane-dense output blocks) and at least 2 grid steps so
    # the "parallel" batch axis can shard across v7x's two TensorCores.
    tile = _round_up(pl.cdiv(batch, 2), 128)
    return min(tile, tile_cap)


def regression_model0(x, params, tile_b=4096, compute_dtype=jnp.bfloat16):
    """x: (B, 61) float. params: [(W, b)] with W (in, out), b (1, out), f32.

    Weights (and x, if needed) are cast once to `compute_dtype` for the MXU;
    biases, accumulation and activations' bias-add/ReLU stay f32.  In a fused
    pipeline the x cast folds into its producer; for a standalone call you can
    pass x already in bf16 to avoid the extra pass over HBM.
    """
    B = x.shape[0]
    tile = _choose_tile(B, tile_b)
    grid = (pl.cdiv(B, tile),)

    (w1, b1), (w2, b2), (w3, b3) = params
    xc = x.astype(compute_dtype)
    w1c = w1.astype(compute_dtype)
    w2c = w2.astype(compute_dtype)
    w3t = w3.reshape(1, DIMS[2]).astype(compute_dtype)   # (1, 32)

    in_specs = [
        pl.BlockSpec((tile, DIMS[0]), lambda i: (i, 0)),   # x: batch-tiled
        pl.BlockSpec(w1c.shape, lambda i: (0, 0)),         # weights/biases:
        pl.BlockSpec(b1.shape, lambda i: (0, 0)),          # constant index_map
        pl.BlockSpec(w2c.shape, lambda i: (0, 0)),         # -> VMEM-resident,
        pl.BlockSpec(b2.shape, lambda i: (0, 0)),          #    fetched once
        pl.BlockSpec(w3t.shape, lambda i: (0, 0)),
        pl.BlockSpec(b3.shape, lambda i: (0, 0)),
    ]

    out = pl.pallas_call(
        mlp_kernel,
        out_shape=jax.ShapeDtypeStruct((1, B), jnp.float32),   # lane-dense slab
        grid=grid,
        in_specs=in_specs,
        out_specs=pl.BlockSpec((1, tile), lambda i: (0, i)),
        compiler_params=pltpu.CompilerParams(
            dimension_semantics=("parallel",),
            vmem_limit_bytes=32 * 1024 * 1024,
        ),
    )(xc, w1c, b1, w2c, b2, w3t, b3)

    return out.reshape(B, 1)


def init_params(key):
    """Deterministic init mimicking nn.Linear's U(-1/sqrt(in), 1/sqrt(in))."""
    params = []
    for i in range(len(DIMS) - 1):
        fan_in, fan_out = DIMS[i], DIMS[i + 1]
        key, kw, kb = jax.random.split(key, 3)
        bound = 1.0 / (fan_in ** 0.5)
        w = jax.random.uniform(kw, (fan_in, fan_out), jnp.float32, -bound, bound)
        b = jax.random.uniform(kb, (1, fan_out), jnp.float32, -bound, bound)
        params.append((w, b))
    return params


def reference_forward(x, params):
    h = x
    for i, (w, b) in enumerate(params):
        h = h @ w + b
        if i < len(params) - 1:
            h = jnp.maximum(h, 0.0)
    return h


if __name__ == "__main__":
    key = jax.random.PRNGKey(0)
    key, kx, kx2 = jax.random.split(key, 3)
    params = init_params(key)

    # bf16 weights/activations vs f32 reference -> loosened tolerance (~1e-3 rel).
    TOL = dict(atol=2e-2, rtol=2e-2)

    # Small smoke test: single full-array block, grid=(1,).
    B = 8
    x = jax.random.normal(kx, (B, DIMS[0]), jnp.float32)
    out = jax.block_until_ready(regression_model0(x, params))
    ref = reference_forward(x, params)
    assert out.shape == (B, 1), out.shape
    assert jnp.allclose(out, ref, **TOL), "mismatch vs reference (B=8)"

    # Ragged, multi-step grid: exercises the >=2-step path and masked tail block.
    B2 = 300
    x2 = jax.random.normal(kx2, (B2, DIMS[0]), jnp.float32)
    out2 = jax.block_until_ready(regression_model0(x2, params))
    ref2 = reference_forward(x2, params)
    assert out2.shape == (B2, 1), out2.shape
    assert jnp.allclose(out2, ref2, **TOL), "mismatch vs reference (B=300)"

    print("KERNEL_OK")
</pallas_src>

<mosaic_0001>
module attributes {stable_mosaic.version = 11 : i64} {
  func.func @mlp_kernel(%arg0: i32, %arg1: memref<8x61xbf16, #tpu.memory_space<vmem>>, %arg2: memref<61x128xbf16, #tpu.memory_space<vmem>>, %arg3: memref<1x128xf32, #tpu.memory_space<vmem>>, %arg4: memref<128x32xbf16, #tpu.memory_space<vmem>>, %arg5: memref<1x32xf32, #tpu.memory_space<vmem>>, %arg6: memref<1x32xbf16, #tpu.memory_space<vmem>>, %arg7: memref<1x1xf32, #tpu.memory_space<vmem>>, %arg8: memref<1x8xf32, #tpu.memory_space<vmem>>) attributes {dimension_semantics = [#tpu.dimension_semantics<parallel>], iteration_bounds = array<i64: 1>, scalar_prefetch = 0 : i64, scratch_operands = 0 : i64, tpu.core_type = #tpu.core_type<tc>, window_params = [{transform_indices = @transform_0, window_bounds = array<i64: 8, 61>}, {pipeline_mode = #tpu.pipeline_mode<synchronous>, transform_indices = @transform_1, window_bounds = array<i64: 61, 128>}, {pipeline_mode = #tpu.pipeline_mode<synchronous>, transform_indices = @transform_2, window_bounds = array<i64: 1, 128>}, {pipeline_mode = #tpu.pipeline_mode<synchronous>, transform_indices = @transform_3, window_bounds = array<i64: 128, 32>}, {pipeline_mode = #tpu.pipeline_mode<synchronous>, transform_indices = @transform_4, window_bounds = array<i64: 1, 32>}, {pipeline_mode = #tpu.pipeline_mode<synchronous>, transform_indices = @transform_5, window_bounds = array<i64: 1, 32>}, {pipeline_mode = #tpu.pipeline_mode<synchronous>, transform_indices = @transform_6, window_bounds = array<i64: 1, 1>}, {transform_indices = @transform_7, window_bounds = array<i64: 1, 8>}]} {
    %c0 = arith.constant 0 : index
    %c0_0 = arith.constant 0 : index
    %0 = vector.load %arg1[%c0, %c0_0] : memref<8x61xbf16, #tpu.memory_space<vmem>>, vector<8x61xbf16>
    %c0_1 = arith.constant 0 : index
    %c0_2 = arith.constant 0 : index
    %1 = vector.load %arg2[%c0_1, %c0_2] : memref<61x128xbf16, #tpu.memory_space<vmem>>, vector<61x128xbf16>
    %cst = arith.constant dense<0.000000e+00> : vector<8x128xf32>
    %2 = tpu.matmul %0, %1, %cst {dimension_numbers = #tpu.dot_dimension_numbers<[1], [0], [0], [1], [0, 0, 1, 1], [], []>} : vector<8x61xbf16>, vector<61x128xbf16>, vector<8x128xf32> -> vector<8x128xf32>
    %c0_3 = arith.constant 0 : index
    %c0_4 = arith.constant 0 : index
    %3 = vector.load %arg3[%c0_3, %c0_4] : memref<1x128xf32, #tpu.memory_space<vmem>>, vector<1x128xf32>
    %4 = vector.broadcast %3 : vector<1x128xf32> to vector<8x128xf32>
    %5 = arith.addf %2, %4 : vector<8x128xf32>
    %cst_5 = arith.constant 0.000000e+00 : f32
    %6 = vector.broadcast %cst_5 : f32 to vector<8x128xf32>
    %7 = arith.maximumf %5, %6 : vector<8x128xf32>
    %8 = arith.truncf %7 : vector<8x128xf32> to vector<8x128xbf16>
    %c0_6 = arith.constant 0 : index
    %c0_7 = arith.constant 0 : index
    %9 = vector.load %arg4[%c0_6, %c0_7] : memref<128x32xbf16, #tpu.memory_space<vmem>>, vector<128x32xbf16>
    %cst_8 = arith.constant dense<0.000000e+00> : vector<8x32xf32>
    %10 = tpu.matmul %8, %9, %cst_8 {dimension_numbers = #tpu.dot_dimension_numbers<[1], [0], [0], [1], [0, 0, 1, 1], [], []>} : vector<8x128xbf16>, vector<128x32xbf16>, vector<8x32xf32> -> vector<8x32xf32>
    %c0_9 = arith.constant 0 : index
    %c0_10 = arith.constant 0 : index
    %11 = vector.load %arg5[%c0_9, %c0_10] : memref<1x32xf32, #tpu.memory_space<vmem>>, vector<1x32xf32>
    %12 = vector.broadcast %11 : vector<1x32xf32> to vector<8x32xf32>
    %13 = arith.addf %10, %12 : vector<8x32xf32>
    %cst_11 = arith.constant 0.000000e+00 : f32
    %14 = vector.broadcast %cst_11 : f32 to vector<8x32xf32>
    %15 = arith.maximumf %13, %14 : vector<8x32xf32>
    %c0_12 = arith.constant 0 : index
    %c0_13 = arith.constant 0 : index
    %16 = vector.load %arg6[%c0_12, %c0_13] : memref<1x32xbf16, #tpu.memory_space<vmem>>, vector<1x32xbf16>
    %17 = arith.truncf %15 : vector<8x32xf32> to vector<8x32xbf16>
    %cst_14 = arith.constant dense<0.000000e+00> : vector<1x8xf32>
    %18 = tpu.matmul %16, %17, %cst_14 {dimension_numbers = #tpu.dot_dimension_numbers<[1], [1], [0], [0], [0, 0, 1, 0], [], []>} : vector<1x32xbf16>, vector<8x32xbf16>, vector<1x8xf32> -> vector<1x8xf32>
    %c0_15 = arith.constant 0 : index
    %c0_16 = arith.constant 0 : index
    %19 = vector.load %arg7[%c0_15, %c0_16] : memref<1x1xf32, #tpu.memory_space<vmem>>, vector<1x1xf32>
    %20 = vector.broadcast %19 : vector<1x1xf32> to vector<1x8xf32>
    %21 = arith.addf %18, %20 : vector<1x8xf32>
    %c0_17 = arith.constant 0 : index
    %c0_18 = arith.constant 0 : index
    %22 = vector.load %arg8[%c0_17, %c0_18] : memref<1x8xf32, #tpu.memory_space<vmem>>, vector<1x8xf32>
    tpu.vector_store %arg8[%c0_17, %c0_18], %21 {strides = array<i32>} : memref<1x8xf32, #tpu.memory_space<vmem>>, vector<1x8xf32>,
    return
  }
  func.func @transform_0(%arg0: i32) -> (i32, i32) {
    %c0_i32 = arith.constant 0 : i32
    %c0_i32_0 = arith.constant 0 : i32
    return %arg0, %c0_i32 : i32, i32
  }
  func.func @transform_1(%arg0: i32) -> (i32, i32) {
    %c0_i32 = arith.constant 0 : i32
    %c0_i32_0 = arith.constant 0 : i32
    %c0_i32_1 = arith.constant 0 : i32
    return %c0_i32, %c0_i32_0 : i32, i32
  }
  func.func @transform_2(%arg0: i32) -> (i32, i32) {
    %c0_i32 = arith.constant 0 : i32
    %c0_i32_0 = arith.constant 0 : i32
    %c0_i32_1 = arith.constant 0 : i32
    return %c0_i32, %c0_i32_0 : i32, i32
  }
  func.func @transform_3(%arg0: i32) -> (i32, i32) {
    %c0_i32 = arith.constant 0 : i32
    %c0_i32_0 = arith.constant 0 : i32
    %c0_i32_1 = arith.constant 0 : i32
    return %c0_i32, %c0_i32_0 : i32, i32
  }
  func.func @transform_4(%arg0: i32) -> (i32, i32) {
    %c0_i32 = arith.constant 0 : i32
    %c0_i32_0 = arith.constant 0 : i32
    %c0_i32_1 = arith.constant 0 : i32
    return %c0_i32, %c0_i32_0 : i32, i32
  }
  func.func @transform_5(%arg0: i32) -> (i32, i32) {
    %c0_i32 = arith.constant 0 : i32
    %c0_i32_0 = arith.constant 0 : i32
    %c0_i32_1 = arith.constant 0 : i32
    return %c0_i32, %c0_i32_0 : i32, i32
  }
  func.func @transform_6(%arg0: i32) -> (i32, i32) {
    %c0_i32 = arith.constant 0 : i32
    %c0_i32_0 = arith.constant 0 : i32
    %c0_i32_1 = arith.constant 0 : i32
    return %c0_i32, %c0_i32_0 : i32, i32
  }
  func.func @transform_7(%arg0: i32) -> (i32, i32) {
    %c0_i32 = arith.constant 0 : i32
    %c0_i32_0 = arith.constant 0 : i32
    return %c0_i32, %arg0 : i32, i32
  }
}

</mosaic_0001>

<bundles_post_ra>
// kernel: tpu_custom_call.1
= control target key start
LH: loop header
LB: loop body
LE: loop exit
PB: predicated region body
PF: predicated region fallthrough
CT: control target
= control target key end

     0   :  { %s532_s0 = inlined_call_operand.vmem [shape: bf16[8,61], index: 0, kind: input, shape index: {}]   ;;  %s533_s1 = inlined_call_operand.vmem [shape: bf16[61,128], index: 1, kind: input, shape index: {}]   ;;  %s534_s2 = inlined_call_operand.vmem [shape: f32[1,128], index: 2, kind: input, shape index: {}]   ;;  %s535_s3 = inlined_call_operand.vmem [shape: bf16[128,32], index: 3, kind: input, shape index: {}]   ;;  %s536_s4 = inlined_call_operand.vmem [shape: f32[1,32], index: 4, kind: input, shape index: {}]   ;;  %s537_s5 = inlined_call_operand.vmem [shape: bf16[1,32], index: 5, kind: input, shape index: {}]   ;;  %s538_s6 = inlined_call_operand.<no memory space> [shape: f32[1,1], index: 6, kind: input, shape index: {}]   ;;  %s539_s7 = inlined_call_operand.hbm [shape: f32[1,8], index: 7, kind: output, shape index: {}]  }
   0x1   :  { %v12_v0 = vstv %s538_s6 }
   0x2   :  { %13 = vst [vmem:[#allocation2] sm:$0x1] %v12_v0 }
   0x3   :  { %v385_v1 = vld [vmem:[%s533_s1] sm:$0xff]   ;;  %v421_v2 = vmov 0.0   ;;  %v386_v3 = vld [vmem:[%s533_s1 + $0x8] sm:$0xff]   ;;  %vm73_vm0 = vcmask 1045504   ;;  %vm74_vm1 = vcmask 1046528   ;;  %v387_v6 = vld [vmem:[%s533_s1 + $0x10] sm:$0xff]  }
   0x4   :  { %341 = vmatprep.subr.bf16.mxu0 %v421_v2  ;;  %353 = vmatprep.subr.bf16.mxu1 %v421_v2  ;;  %v388_v4 = vld [vmem:[%s533_s1 + $0x18] sm:$0x7f]   ;;  %v389_v5 = vld [vmem:[%s535_s3] sm:$0xff]   ;;  %v422_v7 = vmov 65535   ;;  %vm423_vm2 = vmmov 0   ;;  %v390_v10 = vld [vmem:[%s535_s3 + $0x8] sm:$0xff]  }
   0x5   :  { %342 = vmatpush3.bf16.msra.mxu0 %v385_v1  ;;  %v75_v8 = vsel %vm73_vm0, 4294967295, %v422_v7  ;;  %349 = vmatprep.mubr.msk.bf16.mxu0 %vm423_vm2, %v421_v2  ;;  %v391_v12 = vld [vmem:[%s535_s3 + $0x10] sm:$0xff]  }
   0x6   :  { %343 = vmatprep.subr.bf16.mxu0 %v421_v2  ;;  %369 = vmatprep.mubr.msk.bf16.mxu1 %vm423_vm2, %v421_v2  ;;  %v76_v9 = vsel %vm74_vm1, %v75_v8, 0 }
   0x7   :  { %354 = vmatpush3.bf16.msra.mxu1 %v389_v5  ;;  %v78_v11 = vand.u32 %v388_v4, %v76_v9 }
   0x8   :  { %355 = vmatprep.subr.bf16.mxu1 %v421_v2 }
   0x9   :  { %344 = vmatpush3.bf16.msra.mxu0 %v386_v3 }
   0xa   :  { %345 = vmatprep.subr.bf16.mxu0 %v421_v2 }
   0xb   :  { %356 = vmatpush3.bf16.msra.mxu1 %v390_v10 }
   0xc   :  { %357 = vmatprep.subr.bf16.mxu1 %v421_v2 }
   0xd   :  { %346 = vmatpush3.bf16.msra.mxu0 %v387_v6 }
   0xe   :  { %347 = vmatprep.subr.bf16.mxu0 %v421_v2 }
   0xf   :  { %14 = vsyncpa [#allocation4], 0  ;;  %v30_v13 = vld [vmem:[%s532_s0] sm:$0xf]  ;;  %vm69_vm3 = vcmask 498688   ;;  %358 = vmatpush3.bf16.msra.mxu1 %v391_v12  ;;  %v392_v14 = vld [vmem:[%s535_s3 + $0x18] sm:$0xff]   ;;  %v242_v39 = vlaneseq }
  0x10   :  { %359 = vmatprep.subr.bf16.mxu1 %v421_v2  ;;  %v393_v15 = vld [vmem:[%s535_s3 + $0x20] sm:$0xff]   ;;  %v394_v16 = vld [vmem:[%s535_s3 + $0x28] sm:$0xff]   ;;  %v395_v17 = vld [vmem:[%s535_s3 + $0x30] sm:$0xff]   ;;  %v424_v28 = vmov 0   ;;  %vm246_vm4 = vcmask 261120   ;;  %vm293_vm5 = vcmask 57344  }
  0x11   :  { %348 = vmatpush3.bf16.msra.mxu0 %v78_v11  ;;  %v396_v18 = vld [vmem:[%s535_s3 + $0x38] sm:$0xff]   ;;  %v309_v19 = vld [vmem:[%s534_s2] ss:$0 sm:$0xff]  ;;  %384 = vset.pattern.permute.xlu0 %v424_v28  ;;  %v243_v40 = vshrl.u32 %v242_v39, 7 }
  0x12   :  { %373 = vmatprep.subr.bf16.mxu0 %v421_v2  ;;  %v236_v27 = vld [vmem:[#allocation2] sm:$0x1] }
  0x13   :  { %360 = vmatpush3.bf16.msra.mxu1 %v392_v14  ;;  %239 = vperm.xlu0 %384, %v236_v27   ;;  %v315_v29 = vld [vmem:[%s536_s4] ss:$0 sm:$0xff]  ;;  %v244_v41 = vsub.s32 0, %v243_v40  ;;  %s425_s4 = smov [#allocation3]  }
  0x14   :  { %350 = vmatmul.mubr.msk.bf16.vlgmr.msra.gmra.mrb[0].mxu0 %vm69_vm3, %v30_v13  ;;  %361 = vmatprep.subr.bf16.mxu1 %v421_v2  ;;  %v234_v38 = vld [vmem:[%s537_s5] sm:$0x1]  ;;  %s301_s30 = sshll.u32 %s425_s4, 4  ;;  %s302_s30 = int_to_ptr.vmem [resolvable:$true] %s301_s30 }
  0x15   :  { %375 = vmatprep.mubr.msk.bf16.mxu0 %vm423_vm2, %v421_v2  ;;  %s397_s8 = scalar_lea.vmem %s302_s30, 16  ;;  %s401_s6 = scalar_lea.vmem %s302_s30, 32 }
  0x16   :  { %p398_p0 = scmp.ne.s32.totalorder %s302_s30, %s397_s8  ;;  %p402_p1 = scmp.lt.s32.totalorder %s302_s30, %s302_s30 }
  0x17   :  { %362 = vmatpush3.bf16.msra.mxu1 %v393_v15  ;;  %p403_p2 = scmp.lt.s32.totalorder %s401_s6, %s397_s8 }
  0x18   :  { %363 = vmatprep.subr.bf16.mxu1 %v421_v2 }
  0x19   :  { %p404_p3 = por %p403_p2, %p402_p1 }
  0x1b   :  { %364 = vmatpush3.bf16.msra.mxu1 %v394_v16  ;;  %p405_p4 = pnand %p404_p3, %p398_p0 }
  0x1c   :  { %365 = vmatprep.subr.bf16.mxu1 %v421_v2 }
  0x1f   :  { %366 = vmatpush3.bf16.msra.mxu1 %v395_v17 }
  0x20   :  { %367 = vmatprep.subr.bf16.mxu1 %v421_v2 }
  0x23   :  { %368 = vmatpush3.bf16.msra.mxu1 %v396_v18 }
  0x92   :  { %v240_v42 = vpop.permute.xlu0 %239 }
  0x93   :  { %v245_v43 = vrot.slane %v240_v42, %v244_v41 }
  0xe7   :  { %v114_v20 = vpop.f32.mrb[0].mxu0 }
  0xe8   :  { %v115_v21 = vadd.f32 %v309_v19, %v114_v20  ;;  %v351_v22 = vpop.f32.mrb[1].mxu0 }
  0xe9   :  { %v117_v23 = vpop.f32.mrb[2].mxu0 }
  0xea   :  { %v120_v24 = vmax.f32 %v115_v21, 0.0  ;;  %v352_v25 = vpop.f32.mrb[3].mxu0 }
  0xec   :  { %v121_v26 = vpack.c.bf16 %v120_v24, %v120_v24 }
  0xee   :  { %370 = vmatmul.mubr.bf16.vlgmr.msra.gmra.mrb[0].mxu1 %v121_v26 }
 0x1c1   :  { %v227_v30 = vpop.f32.mrb[0].mxu1 }
 0x1c2   :  { %v228_v31 = vadd.f32 %v315_v29, %v227_v30  ;;  %v371_v32 = vpop.f32.mrb[1].mxu1 }
 0x1c3   :  { %v230_v33 = vpop.f32.mrb[2].mxu1 }
 0x1c4   :  { %v233_v34 = vmax.f32 %v228_v31, 0.0  ;;  %v372_v35 = vpop.f32.mrb[3].mxu1 }
 0x1c6   :  { %v235_v36 = vpack.c.bf16 %v233_v34, %v233_v34 }
 0x1c8   :  { %v251_v37 = vsel %vm246_vm4, %v235_v36, 0 }
 0x1c9   :  { %374 = vmatpush3.bf16.xpose.msra.mxu0 %v251_v37 }
 0x1d0   :  { %376 = vmatmul.mubr.msk.bf16.vlgmr.msra.gmra.mrb[4].mxu0 %vm246_vm4, %v234_v38 }
 0x2a3   :  { %v287_v44 = vpop.f32.mrb[4].mxu0 }
 0x2a4   :  { %v288_v45 = vadd.f32 %v287_v44, %v245_v43  ;;  %v377_v46 = vpop.f32.mrb[5].mxu0 }
 0x2a5   :  { %v290_v47 = vpop.f32.mrb[6].mxu0 }
 0x2a6   :  { %v378_v48 = vpop.f32.mrb[7].mxu0  ;;  %294 = vst.msk [vmem:[#allocation3] sm:$0x1] %vm293_vm5, %v288_v45 }
 0x2a7   :  { %408 = shalt.err (!%p405_p4)
}
 0x2a8   :  { %s409_s10 = scalar_lea.hbm %s539_s7, 16 }
 0x2a9   :  { %p410_p5 = scmp.ne.s32.totalorder %s539_s7, %s409_s10  ;;  %p413_p6 = scmp.lt.u32.totalorder %s409_s10, %s539_s7 }
 0x2ab   :  { %p415_p7 = pnand %p413_p6, %p410_p5 }
 0x2ad   :  { %418 = shalt.err (!%p415_p7)
}
 0x2ae   :  { %304 = dma.vmem_to_hbm [thread:$0]  %s302_s30, 16, %s539_s7, [#allocation4]  }
 0x2af   :  { %419 = dma.done.wait [#allocation4], 16  }
 0x2b0   :  { %420 = vsyncadd [#allocation4], 4294967280 }
 0x2b1   :  { %308 = vsyncpa [#allocation4], 1 }

</bundles_post_ra>
